<compile_context>
chip_gen: v7x
topology: tpu7x:2x2x1
jax: 0.10.0
libtpu: 0.0.40
codegen_flags: <defaults>
</compile_context>

<pallas_src>
import jax
import jax.numpy as jnp
from jax import lax
from jax.experimental import pallas as pl
from jax.experimental.pallas import tpu as pltpu

LANE = 128


# ----------------------------- Pallas kernel ---------------------------------
def combined_kernel(pooled_ref,     # [TB, Pp]   mean-pooled patch features (lane-padded)
                    w_patch_ref,    # [Pp, Hp]   patch-embedding weight (lane-padded)
                    b_patch_ref,    # [1,  Hp]   patch-embedding bias (f32)
                    w_proj_ref,     # [Hp, Ep]   visual projection
                    w1_ref,         # [Ep, Hsp]  scorer layer 1
                    b1_ref,         # [1,  Hsp]
                    w2_ref,         # [Hsp, 128] scorer layer 2 (lane-padded output)
                    b2_ref,         # [1,   128]
                    score_ref):     # [TB, 128]  score in column 0 (lane-dense store)
    pooled = pooled_ref[...]

    # --- "clip.get_image_features": patch embed -> visual projection ---------
    h = jnp.dot(pooled.astype(w_patch_ref.dtype), w_patch_ref[...],
                preferred_element_type=jnp.float32) + b_patch_ref[...]        # [TB, Hp]
    emb = jnp.dot(h.astype(w_proj_ref.dtype), w_proj_ref[...],
                  preferred_element_type=jnp.float32)                         # [TB, Ep]

    # --- embeddings = embeddings / embeddings.norm(dim=-1, keepdim=True) -----
    # (padded lanes are exact zeros, so they do not change the norm)
    inv_norm = lax.rsqrt(jnp.sum(emb * emb, axis=-1, keepdims=True) + 1e-12)
    emb = emb * inv_norm

    # --- score = scorer(embeddings): Linear -> ReLU -> Linear ----------------
    z1 = jnp.dot(emb.astype(w1_ref.dtype), w1_ref[...],
                 preferred_element_type=jnp.float32) + b1_ref[...]
    z1 = jnp.maximum(z1, 0.0)
    score = jnp.dot(z1.astype(w2_ref.dtype), w2_ref[...],
                    preferred_element_type=jnp.float32) + b2_ref[...]         # [TB, 128]
    score_ref[...] = score.astype(score_ref.dtype)


# ------------------------------ wrapper helpers --------------------------------
def _round_up(x, m):
    return ((x + m - 1) // m) * m


def _pad_to(x, shape):
    pads = [(0, t - s) for s, t in zip(x.shape, shape)]
    return jnp.pad(x, pads)


def _physical_vmem_bytes():
    """Per-TC physical VMEM; conservative (v7x-sized) fallback if the query fails."""
    try:
        info = pltpu.get_tpu_info()
        for attr in ("vmem_capacity_bytes", "vmem_size_bytes", "vmem_bytes"):
            v = getattr(info, attr, None)
            if v:
                return int(v)
    except Exception:
        pass
    return 64 << 20


def pooled_patch_features(image, patch):
    """Mean over patch positions, fused with patchify.

    Equivalent to patchify_nchw(image, patch).mean(axis=1) (the im2col layout of
    nn.Conv2d(stride=patch) followed by mean pooling over patches) but never
    materializes the [B, N, C*p*p] patch tensor: the reduction fuses with the
    strided image read in XLA.  Exact by linearity of the patch-embed conv.
    """
    B, C, H, W = image.shape
    gh, gw = H // patch, W // patch
    x = image.reshape(B, C, gh, patch, gw, patch)
    pooled = jnp.mean(x, axis=(2, 4))                 # [B, C, p, p]
    return pooled.reshape(B, C * patch * patch)       # [B, P]  (feature order: C, ph, pw)


# ------------------------------ model wrapper ----------------------------------
def combined_model(image, params, patch, *, compute_dtype=jnp.float32,
                   single_buffer_weights=True, max_batch_tile=1024):
    pooled = pooled_patch_features(image, patch)      # [B, P]  (layout + linear pool)
    B, P = pooled.shape
    w_patch, b_patch, w_proj, w1, b1, w2, b2 = params
    H, E, Hs = w_patch.shape[1], w_proj.shape[1], w1.shape[1]

    # --- lane-pad all feature dims to 128 (zero padding is an exact no-op) ----
    Pp, Hp, Ep, Hsp = (_round_up(d, LANE) for d in (P, H, E, Hs))
    w_patch_p = _pad_to(w_patch, (Pp, Hp)).astype(compute_dtype)
    b_patch_p = _pad_to(b_patch, (1, Hp)).astype(jnp.float32)
    w_proj_p  = _pad_to(w_proj, (Hp, Ep)).astype(compute_dtype)
    w1_p      = _pad_to(w1, (Ep, Hsp)).astype(compute_dtype)
    b1_p      = _pad_to(b1, (1, Hsp)).astype(jnp.float32)
    w2_p      = _pad_to(w2, (Hsp, LANE)).astype(compute_dtype)   # score in column 0
    b2_p      = _pad_to(b2, (1, LANE)).astype(jnp.float32)

    # --- per-generation VMEM budget -> batch tile TB ---------------------------
    itemsize = jnp.dtype(compute_dtype).itemsize
    phys = _physical_vmem_bytes()
    budget = (80 << 20) if phys >= (128 << 20) else (44 << 20)   # v5e/v6e vs v7x
    w_bufs = 1 if single_buffer_weights else 2
    weight_bytes = w_bufs * ((Pp * Hp + Hp * Ep + Ep * Hsp + Hsp * LANE) * itemsize
                             + (Hp + Hsp + LANE) * 4)
    per_row = 2 * (Pp * itemsize + LANE * 4)          # double-buffered in + out stream
    avail = budget - weight_bytes - (2 << 20)         # headroom for compiler scratch
    TB = max(8, min(max_batch_tile, (avail // per_row) // 8 * 8))
    B8 = _round_up(B, 8)
    TB = min(TB, B8)
    if phys <= (64 << 20) and B8 >= 16:
        # v7x (2 TCs/chip): ensure >= 2 grid steps so the parallel axis shards.
        TB = min(TB, max(8, (B8 // 2) // 8 * 8))
    B_pad = _round_up(B, TB)
    grid = (B_pad // TB,)

    pooled_p = _pad_to(pooled, (B_pad, Pp)).astype(compute_dtype)

    # --- BlockSpecs -------------------------------------------------------------
    def w_map(i):                 # weights: same (only) block every grid step
        return (0, 0)

    if single_buffer_weights:
        def wspec(shape):         # constant across the grid -> no double buffering
            return pl.BlockSpec(shape, w_map, pipeline_mode=pl.Buffered(1))
    else:
        def wspec(shape):
            return pl.BlockSpec(shape, w_map)

    out = pl.pallas_call(
        combined_kernel,
        out_shape=jax.ShapeDtypeStruct((B_pad, LANE), jnp.float32),
        grid=grid,
        in_specs=[
            pl.BlockSpec((TB, Pp), lambda i: (i, 0)),   # streamed, double-buffered
            wspec((Pp, Hp)),
            wspec((1, Hp)),
            wspec((Hp, Ep)),
            wspec((Ep, Hsp)),
            wspec((1, Hsp)),
            wspec((Hsp, LANE)),
            wspec((1, LANE)),
        ],
        out_specs=pl.BlockSpec((TB, LANE), lambda i: (i, 0)),
        compiler_params=pltpu.CompilerParams(
            # 'parallel' batch axis -> megacore sharding on v7x; ~no-op on v5e/v6e.
            dimension_semantics=("parallel",),
            vmem_limit_bytes=budget,
        ),
    )(pooled_p, w_patch_p, b_patch_p, w_proj_p, w1_p, b1_p, w2_p, b2_p)

    return out[:B, :1]            # real batch rows; score lives in column 0


# --------------------------- reference (pure JAX) ------------------------------
def reference(image, params, patch):
    w_patch, b_patch, w_proj, w1, b1, w2, b2 = params
    B, C, Hh, Ww = image.shape
    gh, gw = Hh // patch, Ww // patch
    x = image.reshape(B, C, gh, patch, gw, patch)
    x = jnp.transpose(x, (0, 2, 4, 1, 3, 5)).reshape(B, gh * gw, C * patch * patch)
    h = jnp.einsum('bnp,ph->bnh', x, w_patch) + b_patch[None]     # per-patch embed
    pooled = jnp.mean(h, axis=1)                                  # pool over patches
    emb = pooled @ w_proj                                         # visual projection
    emb = emb / jnp.linalg.norm(emb, axis=-1, keepdims=True)      # L2 normalize
    z1 = jnp.maximum(emb @ w1 + b1, 0.0)                          # scorer MLP
    return z1 @ w2 + b2


# --------------------------------- main ----------------------------------------
if __name__ == "__main__":
    # small shapes consistent with the forward: NCHW pixel_values
    B, C, HW, PATCH = 2, 3, 16, 4          # 16 patches of 3*4*4 = 48 features
    VIS_H, EMB, SC_H = 64, 32, 64          # vision hidden, embed dim, scorer hidden

    key = jax.random.PRNGKey(0)
    ks = jax.random.split(key, 8)

    image   = jax.random.normal(ks[0], (B, C, HW, HW), dtype=jnp.float32)
    P = C * PATCH * PATCH
    w_patch = jax.random.normal(ks[1], (P, VIS_H), dtype=jnp.float32) * 0.05
    b_patch = jax.random.normal(ks[2], (1, VIS_H), dtype=jnp.float32) * 0.01
    w_proj  = jax.random.normal(ks[3], (VIS_H, EMB), dtype=jnp.float32) * 0.05
    w1      = jax.random.normal(ks[4], (EMB, SC_H), dtype=jnp.float32) * 0.05
    b1      = jax.random.normal(ks[5], (1, SC_H), dtype=jnp.float32) * 0.01
    w2      = jax.random.normal(ks[6], (SC_H, 1), dtype=jnp.float32) * 0.05
    b2      = jax.random.normal(ks[7], (1, 1), dtype=jnp.float32) * 0.01
    params = (w_patch, b_patch, w_proj, w1, b1, w2, b2)

    # f32 by default (strict 1e-4 check); pass compute_dtype=jnp.bfloat16 on
    # v6e/v7x production runs (and loosen the tolerance) for MXU / DMA wins.
    try:
        score = combined_model(image, params, PATCH)
    except Exception:
        # This JAX build rejected pipeline_mode=pl.Buffered(1) on the constant
        # weight specs; fall back to default double-buffered weights.
        score = combined_model(image, params, PATCH, single_buffer_weights=False)
    score = jax.block_until_ready(score)

    ref = reference(image, params, PATCH)
    assert score.shape == (B, 1)
    assert jnp.allclose(score, ref, atol=1e-4, rtol=1e-4), (score, ref)

    print("KERNEL_OK")
</pallas_src>

<mosaic_0001>
module attributes {stable_mosaic.version = 11 : i64} {
  func.func @combined_kernel(%arg0: i32, %arg1: memref<8x128xf32, #tpu.memory_space<vmem>>, %arg2: memref<128x128xf32, #tpu.memory_space<vmem>>, %arg3: memref<1x128xf32, #tpu.memory_space<vmem>>, %arg4: memref<128x128xf32, #tpu.memory_space<vmem>>, %arg5: memref<128x128xf32, #tpu.memory_space<vmem>>, %arg6: memref<1x128xf32, #tpu.memory_space<vmem>>, %arg7: memref<128x128xf32, #tpu.memory_space<vmem>>, %arg8: memref<1x128xf32, #tpu.memory_space<vmem>>, %arg9: memref<8x128xf32, #tpu.memory_space<vmem>>) attributes {dimension_semantics = [#tpu.dimension_semantics<parallel>], iteration_bounds = array<i64: 1>, scalar_prefetch = 0 : i64, scratch_operands = 0 : i64, tpu.core_type = #tpu.core_type<tc>, window_params = [{transform_indices = @transform_0, window_bounds = array<i64: 8, 128>}, {pipeline_mode = #tpu.pipeline_mode<synchronous>, transform_indices = @transform_1, window_bounds = array<i64: 128, 128>}, {pipeline_mode = #tpu.pipeline_mode<synchronous>, transform_indices = @transform_2, window_bounds = array<i64: 1, 128>}, {pipeline_mode = #tpu.pipeline_mode<synchronous>, transform_indices = @transform_3, window_bounds = array<i64: 128, 128>}, {pipeline_mode = #tpu.pipeline_mode<synchronous>, transform_indices = @transform_4, window_bounds = array<i64: 128, 128>}, {pipeline_mode = #tpu.pipeline_mode<synchronous>, transform_indices = @transform_5, window_bounds = array<i64: 1, 128>}, {pipeline_mode = #tpu.pipeline_mode<synchronous>, transform_indices = @transform_6, window_bounds = array<i64: 128, 128>}, {pipeline_mode = #tpu.pipeline_mode<synchronous>, transform_indices = @transform_7, window_bounds = array<i64: 1, 128>}, {transform_indices = @transform_8, window_bounds = array<i64: 8, 128>}]} {
    %c0 = arith.constant 0 : index
    %c0_0 = arith.constant 0 : index
    %0 = vector.load %arg1[%c0, %c0_0] : memref<8x128xf32, #tpu.memory_space<vmem>>, vector<8x128xf32>
    %c0_1 = arith.constant 0 : index
    %c0_2 = arith.constant 0 : index
    %1 = vector.load %arg2[%c0_1, %c0_2] : memref<128x128xf32, #tpu.memory_space<vmem>>, vector<128x128xf32>
    %cst = arith.constant dense<0.000000e+00> : vector<8x128xf32>
    %2 = tpu.matmul %0, %1, %cst {dimension_numbers = #tpu.dot_dimension_numbers<[1], [0], [0], [1], [0, 0, 1, 1], [], []>} : vector<8x128xf32>, vector<128x128xf32>, vector<8x128xf32> -> vector<8x128xf32>
    %c0_3 = arith.constant 0 : index
    %c0_4 = arith.constant 0 : index
    %3 = vector.load %arg3[%c0_3, %c0_4] : memref<1x128xf32, #tpu.memory_space<vmem>>, vector<1x128xf32>
    %4 = vector.broadcast %3 : vector<1x128xf32> to vector<8x128xf32>
    %5 = arith.addf %2, %4 : vector<8x128xf32>
    %c0_5 = arith.constant 0 : index
    %c0_6 = arith.constant 0 : index
    %6 = vector.load %arg4[%c0_5, %c0_6] : memref<128x128xf32, #tpu.memory_space<vmem>>, vector<128x128xf32>
    %cst_7 = arith.constant dense<0.000000e+00> : vector<8x128xf32>
    %7 = tpu.matmul %5, %6, %cst_7 {dimension_numbers = #tpu.dot_dimension_numbers<[1], [0], [0], [1], [0, 0, 1, 1], [], []>} : vector<8x128xf32>, vector<128x128xf32>, vector<8x128xf32> -> vector<8x128xf32>
    %8 = arith.mulf %7, %7 : vector<8x128xf32>
    %cst_8 = arith.constant dense<0.000000e+00> : vector<8xf32>
    %9 = vector.multi_reduction <add>, %8, %cst_8 [1] : vector<8x128xf32> to vector<8xf32>
    %10 = vector.shape_cast %9 : vector<8xf32> to vector<8x1xf32>
    %cst_9 = arith.constant 9.99999996E-13 : f32
    %11 = vector.broadcast %cst_9 : f32 to vector<8x1xf32>
    %12 = arith.addf %10, %11 : vector<8x1xf32>
    %13 = math.rsqrt %12 : vector<8x1xf32>
    %14 = vector.broadcast %13 : vector<8x1xf32> to vector<8x128xf32>
    %15 = arith.mulf %7, %14 : vector<8x128xf32>
    %c0_10 = arith.constant 0 : index
    %c0_11 = arith.constant 0 : index
    %16 = vector.load %arg5[%c0_10, %c0_11] : memref<128x128xf32, #tpu.memory_space<vmem>>, vector<128x128xf32>
    %cst_12 = arith.constant dense<0.000000e+00> : vector<8x128xf32>
    %17 = tpu.matmul %15, %16, %cst_12 {dimension_numbers = #tpu.dot_dimension_numbers<[1], [0], [0], [1], [0, 0, 1, 1], [], []>} : vector<8x128xf32>, vector<128x128xf32>, vector<8x128xf32> -> vector<8x128xf32>
    %c0_13 = arith.constant 0 : index
    %c0_14 = arith.constant 0 : index
    %18 = vector.load %arg6[%c0_13, %c0_14] : memref<1x128xf32, #tpu.memory_space<vmem>>, vector<1x128xf32>
    %19 = vector.broadcast %18 : vector<1x128xf32> to vector<8x128xf32>
    %20 = arith.addf %17, %19 : vector<8x128xf32>
    %cst_15 = arith.constant 0.000000e+00 : f32
    %21 = vector.broadcast %cst_15 : f32 to vector<8x128xf32>
    %22 = arith.maximumf %20, %21 : vector<8x128xf32>
    %c0_16 = arith.constant 0 : index
    %c0_17 = arith.constant 0 : index
    %23 = vector.load %arg7[%c0_16, %c0_17] : memref<128x128xf32, #tpu.memory_space<vmem>>, vector<128x128xf32>
    %cst_18 = arith.constant dense<0.000000e+00> : vector<8x128xf32>
    %24 = tpu.matmul %22, %23, %cst_18 {dimension_numbers = #tpu.dot_dimension_numbers<[1], [0], [0], [1], [0, 0, 1, 1], [], []>} : vector<8x128xf32>, vector<128x128xf32>, vector<8x128xf32> -> vector<8x128xf32>
    %c0_19 = arith.constant 0 : index
    %c0_20 = arith.constant 0 : index
    %25 = vector.load %arg8[%c0_19, %c0_20] : memref<1x128xf32, #tpu.memory_space<vmem>>, vector<1x128xf32>
    %26 = vector.broadcast %25 : vector<1x128xf32> to vector<8x128xf32>
    %27 = arith.addf %24, %26 : vector<8x128xf32>
    %c0_21 = arith.constant 0 : index
    %c0_22 = arith.constant 0 : index
    %28 = vector.load %arg9[%c0_21, %c0_22] : memref<8x128xf32, #tpu.memory_space<vmem>>, vector<8x128xf32>
    tpu.vector_store %arg9[%c0_21, %c0_22], %27 {strides = array<i32>} : memref<8x128xf32, #tpu.memory_space<vmem>>, vector<8x128xf32>,
    return
  }
  func.func @transform_0(%arg0: i32) -> (i32, i32) {
    %c0_i32 = arith.constant 0 : i32
    %c0_i32_0 = arith.constant 0 : i32
    return %arg0, %c0_i32 : i32, i32
  }
  func.func @transform_1(%arg0: i32) -> (i32, i32) {
    %c0_i32 = arith.constant 0 : i32
    %c0_i32_0 = arith.constant 0 : i32
    %c0_i32_1 = arith.constant 0 : i32
    return %c0_i32, %c0_i32_0 : i32, i32
  }
  func.func @transform_2(%arg0: i32) -> (i32, i32) {
    %c0_i32 = arith.constant 0 : i32
    %c0_i32_0 = arith.constant 0 : i32
    %c0_i32_1 = arith.constant 0 : i32
    return %c0_i32, %c0_i32_0 : i32, i32
  }
  func.func @transform_3(%arg0: i32) -> (i32, i32) {
    %c0_i32 = arith.constant 0 : i32
    %c0_i32_0 = arith.constant 0 : i32
    %c0_i32_1 = arith.constant 0 : i32
    return %c0_i32, %c0_i32_0 : i32, i32
  }
  func.func @transform_4(%arg0: i32) -> (i32, i32) {
    %c0_i32 = arith.constant 0 : i32
    %c0_i32_0 = arith.constant 0 : i32
    %c0_i32_1 = arith.constant 0 : i32
    return %c0_i32, %c0_i32_0 : i32, i32
  }
  func.func @transform_5(%arg0: i32) -> (i32, i32) {
    %c0_i32 = arith.constant 0 : i32
    %c0_i32_0 = arith.constant 0 : i32
    %c0_i32_1 = arith.constant 0 : i32
    return %c0_i32, %c0_i32_0 : i32, i32
  }
  func.func @transform_6(%arg0: i32) -> (i32, i32) {
    %c0_i32 = arith.constant 0 : i32
    %c0_i32_0 = arith.constant 0 : i32
    %c0_i32_1 = arith.constant 0 : i32
    return %c0_i32, %c0_i32_0 : i32, i32
  }
  func.func @transform_7(%arg0: i32) -> (i32, i32) {
    %c0_i32 = arith.constant 0 : i32
    %c0_i32_0 = arith.constant 0 : i32
    %c0_i32_1 = arith.constant 0 : i32
    return %c0_i32, %c0_i32_0 : i32, i32
  }
  func.func @transform_8(%arg0: i32) -> (i32, i32) {
    %c0_i32 = arith.constant 0 : i32
    %c0_i32_0 = arith.constant 0 : i32
    return %arg0, %c0_i32 : i32, i32
  }
}

module attributes {stable_mosaic.version = 11 : i64} {
  func.func @combined_kernel(%arg0: i32, %arg1: memref<8x128xf32, #tpu.memory_space<vmem>>, %arg2: memref<128x128xf32, #tpu.memory_space<vmem>>, %arg3: memref<1x128xf32, #tpu.memory_space<vmem>>, %arg4: memref<128x128xf32, #tpu.memory_space<vmem>>, %arg5: memref<128x128xf32, #tpu.memory_space<vmem>>, %arg6: memref<1x128xf32, #tpu.memory_space<vmem>>, %arg7: memref<128x128xf32, #tpu.memory_space<vmem>>, %arg8: memref<1x128xf32, #tpu.memory_space<vmem>>, %arg9: memref<8x128xf32, #tpu.memory_space<vmem>>) attributes {dimension_semantics = [#tpu.dimension_semantics<parallel>], iteration_bounds = array<i64: 1>, scalar_prefetch = 0 : i64, scratch_operands = 0 : i64, tpu.core_type = #tpu.core_type<tc>, window_params = [{transform_indices = @transform_0, window_bounds = array<i64: 8, 128>}, {pipeline_mode = #tpu.pipeline_mode<synchronous>, transform_indices = @transform_1, window_bounds = array<i64: 128, 128>}, {pipeline_mode = #tpu.pipeline_mode<synchronous>, transform_indices = @transform_2, window_bounds = array<i64: 1, 128>}, {pipeline_mode = #tpu.pipeline_mode<synchronous>, transform_indices = @transform_3, window_bounds = array<i64: 128, 128>}, {pipeline_mode = #tpu.pipeline_mode<synchronous>, transform_indices = @transform_4, window_bounds = array<i64: 128, 128>}, {pipeline_mode = #tpu.pipeline_mode<synchronous>, transform_indices = @transform_5, window_bounds = array<i64: 1, 128>}, {pipeline_mode = #tpu.pipeline_mode<synchronous>, transform_indices = @transform_6, window_bounds = array<i64: 128, 128>}, {pipeline_mode = #tpu.pipeline_mode<synchronous>, transform_indices = @transform_7, window_bounds = array<i64: 1, 128>}, {transform_indices = @transform_8, window_bounds = array<i64: 8, 128>}]} {
    %c0 = arith.constant 0 : index
    %c0_0 = arith.constant 0 : index
    %0 = vector.load %arg1[%c0, %c0_0] : memref<8x128xf32, #tpu.memory_space<vmem>>, vector<8x128xf32>
    %c0_1 = arith.constant 0 : index
    %c0_2 = arith.constant 0 : index
    %1 = vector.load %arg2[%c0_1, %c0_2] : memref<128x128xf32, #tpu.memory_space<vmem>>, vector<128x128xf32>
    %cst = arith.constant dense<0.000000e+00> : vector<8x128xf32>
    %2 = tpu.matmul %0, %1, %cst {dimension_numbers = #tpu.dot_dimension_numbers<[1], [0], [0], [1], [0, 0, 1, 1], [], []>} : vector<8x128xf32>, vector<128x128xf32>, vector<8x128xf32> -> vector<8x128xf32>
    %c0_3 = arith.constant 0 : index
    %c0_4 = arith.constant 0 : index
    %3 = vector.load %arg3[%c0_3, %c0_4] : memref<1x128xf32, #tpu.memory_space<vmem>>, vector<1x128xf32>
    %4 = vector.broadcast %3 : vector<1x128xf32> to vector<8x128xf32>
    %5 = arith.addf %2, %4 : vector<8x128xf32>
    %c0_5 = arith.constant 0 : index
    %c0_6 = arith.constant 0 : index
    %6 = vector.load %arg4[%c0_5, %c0_6] : memref<128x128xf32, #tpu.memory_space<vmem>>, vector<128x128xf32>
    %cst_7 = arith.constant dense<0.000000e+00> : vector<8x128xf32>
    %7 = tpu.matmul %5, %6, %cst_7 {dimension_numbers = #tpu.dot_dimension_numbers<[1], [0], [0], [1], [0, 0, 1, 1], [], []>} : vector<8x128xf32>, vector<128x128xf32>, vector<8x128xf32> -> vector<8x128xf32>
    %8 = arith.mulf %7, %7 : vector<8x128xf32>
    %cst_8 = arith.constant dense<0.000000e+00> : vector<8xf32>
    %9 = vector.multi_reduction <add>, %8, %cst_8 [1] : vector<8x128xf32> to vector<8xf32>
    %10 = vector.shape_cast %9 : vector<8xf32> to vector<8x1xf32>
    %cst_9 = arith.constant 9.99999996E-13 : f32
    %11 = vector.broadcast %cst_9 : f32 to vector<8x1xf32>
    %12 = arith.addf %10, %11 : vector<8x1xf32>
    %13 = math.rsqrt %12 : vector<8x1xf32>
    %14 = vector.broadcast %13 : vector<8x1xf32> to vector<8x128xf32>
    %15 = arith.mulf %7, %14 : vector<8x128xf32>
    %c0_10 = arith.constant 0 : index
    %c0_11 = arith.constant 0 : index
    %16 = vector.load %arg5[%c0_10, %c0_11] : memref<128x128xf32, #tpu.memory_space<vmem>>, vector<128x128xf32>
    %cst_12 = arith.constant dense<0.000000e+00> : vector<8x128xf32>
    %17 = tpu.matmul %15, %16, %cst_12 {dimension_numbers = #tpu.dot_dimension_numbers<[1], [0], [0], [1], [0, 0, 1, 1], [], []>} : vector<8x128xf32>, vector<128x128xf32>, vector<8x128xf32> -> vector<8x128xf32>
    %c0_13 = arith.constant 0 : index
    %c0_14 = arith.constant 0 : index
    %18 = vector.load %arg6[%c0_13, %c0_14] : memref<1x128xf32, #tpu.memory_space<vmem>>, vector<1x128xf32>
    %19 = vector.broadcast %18 : vector<1x128xf32> to vector<8x128xf32>
    %20 = arith.addf %17, %19 : vector<8x128xf32>
    %cst_15 = arith.constant 0.000000e+00 : f32
    %21 = vector.broadcast %cst_15 : f32 to vector<8x128xf32>
    %22 = arith.maximumf %20, %21 : vector<8x128xf32>
    %c0_16 = arith.constant 0 : index
    %c0_17 = arith.constant 0 : index
    %23 = vector.load %arg7[%c0_16, %c0_17] : memref<128x128xf32, #tpu.memory_space<vmem>>, vector<128x128xf32>
    %cst_18 = arith.constant dense<0.000000e+00> : vector<8x128xf32>
    %24 = tpu.matmul %22, %23, %cst_18 {dimension_numbers = #tpu.dot_dimension_numbers<[1], [0], [0], [1], [0, 0, 1, 1], [], []>} : vector<8x128xf32>, vector<128x128xf32>, vector<8x128xf32> -> vector<8x128xf32>
    %c0_19 = arith.constant 0 : index
    %c0_20 = arith.constant 0 : index
    %25 = vector.load %arg8[%c0_19, %c0_20] : memref<1x128xf32, #tpu.memory_space<vmem>>, vector<1x128xf32>
    %26 = vector.broadcast %25 : vector<1x128xf32> to vector<8x128xf32>
    %27 = arith.addf %24, %26 : vector<8x128xf32>
    %c0_21 = arith.constant 0 : index
    %c0_22 = arith.constant 0 : index
    %28 = vector.load %arg9[%c0_21, %c0_22] : memref<8x128xf32, #tpu.memory_space<vmem>>, vector<8x128xf32>
    tpu.vector_store %arg9[%c0_21, %c0_22], %27 {strides = array<i32>} : memref<8x128xf32, #tpu.memory_space<vmem>>, vector<8x128xf32>,
    return
  }
  func.func @transform_0(%arg0: i32) -> (i32, i32) {
    %c0_i32 = arith.constant 0 : i32
    %c0_i32_0 = arith.constant 0 : i32
    return %arg0, %c0_i32 : i32, i32
  }
  func.func @transform_1(%arg0: i32) -> (i32, i32) {
    %c0_i32 = arith.constant 0 : i32
    %c0_i32_0 = arith.constant 0 : i32
    %c0_i32_1 = arith.constant 0 : i32
    return %c0_i32, %c0_i32_0 : i32, i32
  }
  func.func @transform_2(%arg0: i32) -> (i32, i32) {
    %c0_i32 = arith.constant 0 : i32
    %c0_i32_0 = arith.constant 0 : i32
    %c0_i32_1 = arith.constant 0 : i32
    return %c0_i32, %c0_i32_0 : i32, i32
  }
  func.func @transform_3(%arg0: i32) -> (i32, i32) {
    %c0_i32 = arith.constant 0 : i32
    %c0_i32_0 = arith.constant 0 : i32
    %c0_i32_1 = arith.constant 0 : i32
    return %c0_i32, %c0_i32_0 : i32, i32
  }
  func.func @transform_4(%arg0: i32) -> (i32, i32) {
    %c0_i32 = arith.constant 0 : i32
    %c0_i32_0 = arith.constant 0 : i32
    %c0_i32_1 = arith.constant 0 : i32
    return %c0_i32, %c0_i32_0 : i32, i32
  }
  func.func @transform_5(%arg0: i32) -> (i32, i32) {
    %c0_i32 = arith.constant 0 : i32
    %c0_i32_0 = arith.constant 0 : i32
    %c0_i32_1 = arith.constant 0 : i32
    return %c0_i32, %c0_i32_0 : i32, i32
  }
  func.func @transform_6(%arg0: i32) -> (i32, i32) {
    %c0_i32 = arith.constant 0 : i32
    %c0_i32_0 = arith.constant 0 : i32
    %c0_i32_1 = arith.constant 0 : i32
    return %c0_i32, %c0_i32_0 : i32, i32
  }
  func.func @transform_7(%arg0: i32) -> (i32, i32) {
    %c0_i32 = arith.constant 0 : i32
    %c0_i32_0 = arith.constant 0 : i32
    %c0_i32_1 = arith.constant 0 : i32
    return %c0_i32, %c0_i32_0 : i32, i32
  }
  func.func @transform_8(%arg0: i32) -> (i32, i32) {
    %c0_i32 = arith.constant 0 : i32
    %c0_i32_0 = arith.constant 0 : i32
    return %arg0, %c0_i32 : i32, i32
  }
}

</mosaic_0001>

<bundles_post_ra>
// kernel: tpu_custom_call.1
= control target key start
LH: loop header
LB: loop body
LE: loop exit
PB: predicated region body
PF: predicated region fallthrough
CT: control target
= control target key end

     0   :  { %13 = vsyncpa [#allocation3], 0  ;;  %s1136_s0 = inlined_call_operand.hbm [shape: f32[8,128], index: 0, kind: input, shape index: {}]   ;;  %s1137_s1 = inlined_call_operand.hbm [shape: f32[128,128], index: 1, kind: input, shape index: {}]   ;;  %s1138_s2 = inlined_call_operand.vmem [shape: f32[1,128], index: 2, kind: input, shape index: {}]   ;;  %s1139_s3 = inlined_call_operand.hbm [shape: f32[128,128], index: 3, kind: input, shape index: {}]   ;;  %s1140_s4 = inlined_call_operand.hbm [shape: f32[128,128], index: 4, kind: input, shape index: {}]   ;;  %s1141_s5 = inlined_call_operand.vmem [shape: f32[1,128], index: 5, kind: input, shape index: {}]   ;;  %s1142_s6 = inlined_call_operand.hbm [shape: f32[128,128], index: 6, kind: input, shape index: {}]   ;;  %s1143_s7 = inlined_call_operand.vmem [shape: f32[1,128], index: 7, kind: input, shape index: {}]   ;;  %s1144_s8 = inlined_call_operand.hbm [shape: f32[8,128], index: 8, kind: output, shape index: {}]  }
   0x1   :  { %14 = vsyncpa [#allocation6], 0 }
   0x2   :  { %15 = vsyncpa [#allocation9], 0 }
   0x3   :  { %16 = vsyncpa [#allocation4], 0  ;;  %s947_s27 = smov [#allocation5]   ;;  %s807_s9 = scalar_lea.hbm %s1137_s1, 2048 }
   0x4   :  { %s32_s28 = sshll.u32 %s947_s27, 4  ;;  %p808_p0 = scmp.ne.s32.totalorder %s1137_s1, %s807_s9  ;;  %s33_s28 = int_to_ptr.vmem [resolvable:$true] %s32_s28 }
   0x5   :  { %p811_p1 = scmp.lt.u32.totalorder %s807_s9, %s1137_s1 }
   0x7   :  { %p813_p2 = pnand %p811_p1, %p808_p0 }
   0x9   :  { %816 = shalt.err (!%p813_p2)
}
   0xa   :  { %s817_s14 = scalar_lea.vmem %s33_s28, 2048  ;;  %p822_p4 = scmp.lt.s32.totalorder %s33_s28, %s33_s28 }
   0xb   :  { %p818_p3 = scmp.ne.s32.totalorder %s33_s28, %s817_s14  ;;  %p823_p5 = scmp.lt.s32.totalorder %s817_s14, %s817_s14 }
   0xd   :  { %p824_p6 = por %p823_p5, %p822_p4 }
   0xf   :  { %p825_p7 = pnand %p824_p6, %p818_p3 }
  0x11   :  { %828 = shalt.err (!%p825_p7)
}
  0x12   :  { %s948_s15 = smov 128   ;;  %s949_s16 = smov 8  }
  0x13   :  { %38 = dma.hbm_to_vmem [thread:$0]  %s1137_s1, 2048, %s33_s28, [#allocation6], %s948_s15, %s948_s15, %s949_s16  }
  0x14   :  { %s950_s19 = smov [#allocation8]   ;;  %s951_s21 = smov [#allocation2]  }
  0x15   :  { %s58_s20 = sshll.u32 %s950_s19, 4  ;;  %s23_s22 = sshll.u32 %s951_s21, 4  ;;  %s59_s20 = int_to_ptr.vmem [resolvable:$true] %s58_s20  ;;  %s24_s22 = int_to_ptr.vmem [resolvable:$true] %s23_s22 }
  0x16   :  { %s829_s25 = scalar_lea.hbm %s1140_s4, 2048 }
  0x17   :  { %p830_p8 = scmp.ne.s32.totalorder %s1140_s4, %s829_s25  ;;  %p833_p9 = scmp.lt.u32.totalorder %s829_s25, %s1140_s4 }
  0x19   :  { %p835_p10 = pnand %p833_p9, %p830_p8 }
  0x1b   :  { %838 = shalt.err (!%p835_p10)
}
  0x1c   :  { %s839_s1 = scalar_lea.vmem %s59_s20, 2048  ;;  %p844_p12 = scmp.lt.s32.totalorder %s59_s20, %s59_s20 }
  0x1d   :  { %p840_p11 = scmp.ne.s32.totalorder %s59_s20, %s839_s1  ;;  %p845_p13 = scmp.lt.s32.totalorder %s839_s1, %s839_s1 }
  0x1f   :  { %p846_p0 = por %p845_p13, %p844_p12 }
  0x21   :  { %p847_p1 = pnand %p846_p0, %p840_p11 }
  0x23   :  { %850 = shalt.err (!%p847_p1)
}
  0x24   :  { %64 = dma.hbm_to_vmem [thread:$0]  %s1140_s4, 2048, %s59_s20, [#allocation9], %s948_s15, %s948_s15, %s949_s16  }
  0x25   :  { %s851_s12 = scalar_lea.hbm %s1136_s0, 128 }
  0x26   :  { %p852_p2 = scmp.ne.s32.totalorder %s1136_s0, %s851_s12  ;;  %p855_p3 = scmp.lt.u32.totalorder %s851_s12, %s1136_s0 }
  0x28   :  { %p857_p4 = pnand %p855_p3, %p852_p2 }
  0x2a   :  { %860 = shalt.err (!%p857_p4)
}
  0x2b   :  { %s861_s19 = scalar_lea.vmem %s24_s22, 128  ;;  %p866_p6 = scmp.lt.s32.totalorder %s24_s22, %s24_s22 }
  0x2c   :  { %p862_p5 = scmp.ne.s32.totalorder %s24_s22, %s861_s19  ;;  %p867_p7 = scmp.lt.s32.totalorder %s861_s19, %s861_s19 }
  0x2e   :  { %p868_p8 = por %p867_p7, %p866_p6 }
  0x30   :  { %p869_p9 = pnand %p868_p8, %p862_p5 }
  0x32   :  { %872 = shalt.err (!%p869_p9)
}
  0x33   :  { %26 = dma.hbm_to_vmem [thread:$0]  %s1136_s0, 128, %s24_s22, [#allocation3]  }
  0x34   :  { %s952_s21 = smov [#allocation7]   ;;  %s953_s24 = smov [#allocation10]  }
  0x35   :  { %s46_s23 = sshll.u32 %s952_s21, 4  ;;  %s72_s25 = sshll.u32 %s953_s24, 4  ;;  %s47_s23 = int_to_ptr.vmem [resolvable:$true] %s46_s23  ;;  %s73_s25 = int_to_ptr.vmem [resolvable:$true] %s72_s25 }
  0x36   :  { %s873_s29 = scalar_lea.hbm %s1139_s3, 2048 }
  0x37   :  { %p874_p10 = scmp.ne.s32.totalorder %s1139_s3, %s873_s29  ;;  %p877_p11 = scmp.lt.u32.totalorder %s873_s29, %s1139_s3 }
  0x39   :  { %p879_p12 = pnand %p877_p11, %p874_p10 }
  0x3b   :  { %882 = shalt.err (!%p879_p12)
}
  0x3c   :  { %s883_s0 = scalar_lea.vmem %s47_s23, 2048  ;;  %p888_p0 = scmp.lt.s32.totalorder %s47_s23, %s47_s23 }
  0x3d   :  { %p884_p13 = scmp.ne.s32.totalorder %s47_s23, %s883_s0  ;;  %p889_p1 = scmp.lt.s32.totalorder %s883_s0, %s883_s0 }
  0x3f   :  { %p890_p2 = por %p889_p1, %p888_p0 }
  0x41   :  { %p891_p3 = pnand %p890_p2, %p884_p13 }
  0x43   :  { %894 = shalt.err (!%p891_p3)
}
  0x44   :  { %52 = dma.hbm_to_vmem [thread:$0]  %s1139_s3, 2048, %s47_s23, [#allocation6], %s948_s15, %s948_s15, %s949_s16  }
  0x45   :  { %s895_s13 = scalar_lea.hbm %s1142_s6, 2048 }
  0x46   :  { %p896_p4 = scmp.ne.s32.totalorder %s1142_s6, %s895_s13  ;;  %p899_p5 = scmp.lt.u32.totalorder %s895_s13, %s1142_s6 }
  0x48   :  { %p901_p6 = pnand %p899_p5, %p896_p4 }
  0x4a   :  { %904 = shalt.err (!%p901_p6)
}
  0x4b   :  { %s905_s4 = scalar_lea.vmem %s73_s25, 2048  ;;  %p910_p8 = scmp.lt.s32.totalorder %s73_s25, %s73_s25 }
  0x4c   :  { %p906_p7 = scmp.ne.s32.totalorder %s73_s25, %s905_s4  ;;  %p911_p9 = scmp.lt.s32.totalorder %s905_s4, %s905_s4 }
  0x4e   :  { %p912_p10 = por %p911_p9, %p910_p8 }
  0x50   :  { %p913_p11 = pnand %p912_p10, %p906_p7 }
  0x52   :  { %916 = shalt.err (!%p913_p11)
}
  0x53   :  { %78 = dma.hbm_to_vmem [thread:$0]  %s1142_s6, 2048, %s73_s25, [#allocation9], %s948_s15, %s948_s15, %s949_s16  }
  0x54   :  { %939 = dma.done.wait [#allocation3], 128  }
  0x55   :  { %940 = vsyncadd [#allocation3], 4294967168 }
  0x56   :  { %941 = dma.done.wait [#allocation6], 4096  }
  0x57   :  { %942 = vsyncadd [#allocation6], 4294963200 }
  0x58   :  { %943 = dma.done.wait [#allocation9], 4096  }
  0x59   :  { %944 = vsyncadd [#allocation9], 4294963200  ;;  %v954_v0 = vmov 0.0|0.0   ;;  %vm955_vm0 = vmmov 0   ;;  %v956_v1 = vmov 0.0   ;;  %v97_v2 = vld [vmem:[#allocation5] sm:$0xff] }
  0x5a   :  { %698 = vmatprep.subr.bf16.mxu0 %v954_v0  ;;  %590 = vmatprep.mubr.msk.f32.mxu0 %vm955_vm0, %v956_v1  ;;  %v98_v3 = vld [vmem:[#allocation5 + $0x8] sm:$0xff]  ;;  %v99_v4 = vld [vmem:[#allocation5 + $0x10] sm:$0xff]  ;;  %v100_v6 = vld [vmem:[#allocation5 + $0x18] sm:$0xff]  ;;  %s957_s24 = smov [#allocation11]  }
  0x5b   :  { %722 = vmatprep.subr.bf16.mxu1 %v954_v0  ;;  %625 = vmatprep.mubr.msk.f32.mxu1 %vm955_vm0, %v956_v1  ;;  %v699_v5 = vpack.c.bf16 %v98_v3, %v97_v2  ;;  %v702_v7 = vpack.c.bf16 %v100_v6, %v99_v4  ;;  %v101_v8 = vld [vmem:[#allocation5 + $0x20] sm:$0xff]  ;;  %v102_v9 = vld [vmem:[#allocation5 + $0x28] sm:$0xff]  ;;  %v192_v12 = vld [vmem:[#allocation7 + $0x10] sm:$0xff]  ;;  %s476_s25 = sshll.u32 %s957_s24, 4  ;;  %s477_s25 = int_to_ptr.vmem [resolvable:$true] %s476_s25 }
  0x5c   :  { %v190_v10 = vld [vmem:[#allocation7] sm:$0xff]  ;;  %v191_v11 = vld [vmem:[#allocation7 + $0x8] sm:$0xff]  ;;  %v193_v13 = vld [vmem:[#allocation7 + $0x18] sm:$0xff]  ;;  %v705_v14 = vpack.c.bf16 %v102_v9, %v101_v8  ;;  %s917_s26 = scalar_lea.vmem %s477_s25, 128  ;;  %p922_p13 = scmp.lt.s32.totalorder %s477_s25, %s477_s25 }
  0x5d   :  { %700 = vmatpush3.bf16.msra.mxu0 %v699_v5  ;;  %v723_v15 = vpack.c.bf16 %v191_v11, %v190_v10  ;;  %v103_v16 = vld [vmem:[#allocation5 + $0x30] sm:$0xff]  ;;  %v104_v17 = vld [vmem:[#allocation5 + $0x38] sm:$0xff]  ;;  %v726_v18 = vpack.c.bf16 %v193_v13, %v192_v12  ;;  %v194_v19 = vld [vmem:[#allocation7 + $0x20] sm:$0xff]  ;;  %p918_p12 = scmp.ne.s32.totalorder %s477_s25, %s917_s26  ;;  %p923_p0 = scmp.lt.s32.totalorder %s917_s26, %s917_s26 }
  0x5e   :  { %701 = vmatprep.subr.bf16.mxu0 %v954_v0  ;;  %v195_v20 = vld [vmem:[#allocation7 + $0x28] sm:$0xff]  ;;  %v708_v21 = vpack.c.bf16 %v104_v17, %v103_v16  ;;  %v105_v22 = vld [vmem:[#allocation5 + $0x40] sm:$0xff]  ;;  %v196_v25 = vld [vmem:[#allocation7 + $0x30] sm:$0xff] }
  0x5f   :  { %724 = vmatpush3.bf16.msra.mxu1 %v723_v15  ;;  %v106_v23 = vld [vmem:[#allocation5 + $0x48] sm:$0xff]  ;;  %v729_v24 = vpack.c.bf16 %v195_v20, %v194_v19  ;;  %v197_v26 = vld [vmem:[#allocation7 + $0x38] sm:$0xff]  ;;  %v107_v28 = vld [vmem:[#allocation5 + $0x50] sm:$0xff]  ;;  %p924_p1 = por %p923_p0, %p922_p13 }
  0x60   :  { %725 = vmatprep.subr.bf16.mxu1 %v954_v0  ;;  %v711_v27 = vpack.c.bf16 %v106_v23, %v105_v22  ;;  %v108_v29 = vld [vmem:[#allocation5 + $0x58] sm:$0xff]  ;;  %v732_v30 = vpack.c.bf16 %v197_v26, %v196_v25  ;;  %v198_v31 = vld [vmem:[#allocation7 + $0x40] sm:$0xff]  ;;  %v199_v32 = vld [vmem:[#allocation7 + $0x48] sm:$0xff] }
  0x61   :  { %703 = vmatpush3.bf16.msra.mxu0 %v702_v7  ;;  %v714_v33 = vpack.c.bf16 %v108_v29, %v107_v28  ;;  %v109_v34 = vld [vmem:[#allocation5 + $0x60] sm:$0xff]  ;;  %v110_v35 = vld [vmem:[#allocation5 + $0x68] sm:$0xff]  ;;  %v735_v36 = vpack.c.bf16 %v199_v32, %v198_v31  ;;  %v200_v37 = vld [vmem:[#allocation7 + $0x50] sm:$0xff]  ;;  %p925_p2 = pnand %p924_p1, %p918_p12 }
  0x62   :  { %704 = vmatprep.subr.bf16.mxu0 %v954_v0  ;;  %v201_v38 = vld [vmem:[#allocation7 + $0x58] sm:$0xff]  ;;  %v717_v39 = vpack.c.bf16 %v110_v35, %v109_v34  ;;  %v111_v40 = vld [vmem:[#allocation5 + $0x70] sm:$0xff]  ;;  %v202_v43 = vld [vmem:[#allocation7 + $0x60] sm:$0xff] }
  0x63   :  { %727 = vmatpush3.bf16.msra.mxu1 %v726_v18  ;;  %v112_v41 = vld [vmem:[#allocation5 + $0x78] sm:$0xff]  ;;  %v738_v42 = vpack.c.bf16 %v201_v38, %v200_v37  ;;  %v203_v44 = vld [vmem:[#allocation7 + $0x68] sm:$0xff]  ;;  %v204_v48 = vld [vmem:[#allocation7 + $0x70] sm:$0xff] }
  0x64   :  { %728 = vmatprep.subr.bf16.mxu1 %v954_v0  ;;  %v720_v45 = vpack.c.bf16 %v112_v41, %v111_v40  ;;  %v741_v46 = vpack.c.bf16 %v203_v44, %v202_v43  ;;  %v96_v47 = vld [vmem:[#allocation2] sm:$0xff]  ;;  %v282_v55 = vld [vmem:[#allocation8] sm:$0xff]  ;;  %v283_v56 = vld [vmem:[#allocation8 + $0x8] sm:$0xff] }
  0x65   :  { %706 = vmatpush3.bf16.msra.mxu0 %v705_v14  ;;  %v205_v49 = vld [vmem:[#allocation7 + $0x78] sm:$0xff]  ;;  %v284_v57 = vld [vmem:[#allocation8 + $0x10] sm:$0xff]  ;;  %v747_v58 = vpack.c.bf16 %v283_v56, %v282_v55  ;;  %v286_v61 = vld [vmem:[#allocation8 + $0x20] sm:$0xff] }
  0x66   :  { %707 = vmatprep.subr.bf16.mxu0 %v954_v0  ;;  %v744_v50 = vpack.c.bf16 %v205_v49, %v204_v48  ;;  %v487_v51 = vld [vmem:[%s1138_s2] ss:$0 sm:$0xff]  ;;  %v287_v62 = vld [vmem:[#allocation8 + $0x28] sm:$0xff]  ;;  %v288_v2 = vld [vmem:[#allocation8 + $0x30] sm:$0xff] }
  0x67   :  { %730 = vmatpush3.bf16.msra.mxu1 %v729_v24  ;;  %v285_v59 = vld [vmem:[#allocation8 + $0x18] sm:$0xff]  ;;  %v753_v63 = vpack.c.bf16 %v287_v62, %v286_v61  ;;  %v290_v7 = vld [vmem:[#allocation8 + $0x40] sm:$0xff]  ;;  %v291_v8 = vld [vmem:[#allocation8 + $0x48] sm:$0xff] }
  0x68   :  { %731 = vmatprep.subr.bf16.mxu1 %v954_v0  ;;  %v750_v60 = vpack.c.bf16 %v285_v59, %v284_v57  ;;  %v289_v3 = vld [vmem:[#allocation8 + $0x38] sm:$0xff]  ;;  %v759_v9 = vpack.c.bf16 %v291_v8, %v290_v7  ;;  %v292_v10 = vld [vmem:[#allocation8 + $0x50] sm:$0xff]  ;;  %v294_v13 = vld [vmem:[#allocation8 + $0x60] sm:$0xff] }
  0x69   :  { %709 = vmatpush3.bf16.msra.mxu0 %v708_v21  ;;  %v756_v4 = vpack.c.bf16 %v289_v3, %v288_v2  ;;  %v293_v11 = vld [vmem:[#allocation8 + $0x58] sm:$0xff]  ;;  %v295_v14 = vld [vmem:[#allocation8 + $0x68] sm:$0xff]  ;;  %v296_v16 = vld [vmem:[#allocation8 + $0x70] sm:$0xff] }
  0x6a   :  { %710 = vmatprep.subr.bf16.mxu0 %v954_v0  ;;  %v762_v12 = vpack.c.bf16 %v293_v11, %v292_v10  ;;  %v765_v15 = vpack.c.bf16 %v295_v14, %v294_v13  ;;  %v297_v17 = vld [vmem:[#allocation8 + $0x78] sm:$0xff]  ;;  %v376_v19 = vld [vmem:[#allocation10] sm:$0xff]  ;;  %v377_v20 = vld [vmem:[#allocation10 + $0x8] sm:$0xff] }
  0x6b   :  { %733 = vmatpush3.bf16.msra.mxu1 %v732_v30  ;;  %v768_v18 = vpack.c.bf16 %v297_v17, %v296_v16  ;;  %v378_v21 = vld [vmem:[#allocation10 + $0x10] sm:$0xff]  ;;  %v771_v22 = vpack.c.bf16 %v377_v20, %v376_v19  ;;  %v379_v23 = vld [vmem:[#allocation10 + $0x18] sm:$0xff]  ;;  %v380_v25 = vld [vmem:[#allocation10 + $0x20] sm:$0xff] }
  0x6c   :  { %734 = vmatprep.subr.bf16.mxu1 %v954_v0  ;;  %v774_v24 = vpack.c.bf16 %v379_v23, %v378_v21  ;;  %v381_v26 = vld [vmem:[#allocation10 + $0x28] sm:$0xff]  ;;  %v382_v28 = vld [vmem:[#allocation10 + $0x30] sm:$0xff]  ;;  %v383_v29 = vld [vmem:[#allocation10 + $0x38] sm:$0xff] }
  0x6d   :  { %712 = vmatpush3.bf16.msra.mxu0 %v711_v27  ;;  %v777_v27 = vpack.c.bf16 %v381_v26, %v380_v25  ;;  %v780_v30 = vpack.c.bf16 %v383_v29, %v382_v28  ;;  %v384_v31 = vld [vmem:[#allocation10 + $0x40] sm:$0xff]  ;;  %v385_v32 = vld [vmem:[#allocation10 + $0x48] sm:$0xff]  ;;  %v386_v34 = vld [vmem:[#allocation10 + $0x50] sm:$0xff] }
  0x6e   :  { %713 = vmatprep.subr.bf16.mxu0 %v954_v0  ;;  %v387_v35 = vld [vmem:[#allocation10 + $0x58] sm:$0xff]  ;;  %v388_v37 = vld [vmem:[#allocation10 + $0x60] sm:$0xff]  ;;  %v389_v38 = vld [vmem:[#allocation10 + $0x68] sm:$0xff] }
  0x6f   :  { %736 = vmatpush3.bf16.msra.mxu1 %v735_v36  ;;  %v786_v36 = vpack.c.bf16 %v387_v35, %v386_v34  ;;  %v390_v44 = vld [vmem:[#allocation10 + $0x70] sm:$0xff] }
  0x70   :  { %737 = vmatprep.subr.bf16.mxu1 %v954_v0 }
  0x71   :  { %715 = vmatpush3.bf16.msra.mxu0 %v714_v33  ;;  %v783_v33 = vpack.c.bf16 %v385_v32, %v384_v31 }
  0x72   :  { %716 = vmatprep.subr.bf16.mxu0 %v954_v0 }
  0x73   :  { %739 = vmatpush3.bf16.msra.mxu1 %v738_v42 }
  0x74   :  { %740 = vmatprep.subr.bf16.mxu1 %v954_v0 }
  0x75   :  { %718 = vmatpush3.bf16.msra.mxu0 %v717_v39  ;;  %v789_v39 = vpack.c.bf16 %v389_v38, %v388_v37 }
  0x76   :  { %719 = vmatprep.subr.bf16.mxu0 %v954_v0 }
  0x77   :  { %742 = vmatpush3.bf16.msra.mxu1 %v741_v46 }
  0x78   :  { %743 = vmatprep.subr.bf16.mxu1 %v954_v0 }
  0x79   :  { %721 = vmatpush3.bf16.msra.mxu0 %v720_v45  ;;  %v391_v45 = vld [vmem:[#allocation10 + $0x78] sm:$0xff] }
  0x7a   :  { %746 = vmatprep.subr.bf16.mxu0 %v954_v0  ;;  %v792_v46 = vpack.c.bf16 %v391_v45, %v390_v44 }
  0x7b   :  { %745 = vmatpush3.bf16.msra.mxu1 %v744_v50 }
  0x7c   :  { %591 = vmatmul.mubr.f32.vlgmr.msra.gmra.mrb[0].mxu0 %v96_v47  ;;  %770 = vmatprep.subr.bf16.mxu1 %v954_v0  ;;  %v488_v47 = vld [vmem:[%s1141_s5] ss:$0 sm:$0xff] }
  0x7d   :  { %660 = vmatprep.mubr.msk.f32.mxu0 %vm955_vm0, %v956_v1  ;;  %748 = vmatpush3.bf16.msra.mxu0 %v747_v58 }
  0x7e   :  { %749 = vmatprep.subr.bf16.mxu0 %v954_v0 }
  0x81   :  { %751 = vmatpush3.bf16.msra.mxu0 %v750_v60 }
  0x82   :  { %752 = vmatprep.subr.bf16.mxu0 %v954_v0 }
  0x85   :  { %754 = vmatpush3.bf16.msra.mxu0 %v753_v63 }
  0x86   :  { %755 = vmatprep.subr.bf16.mxu0 %v954_v0 }
  0x89   :  { %757 = vmatpush3.bf16.msra.mxu0 %v756_v4 }
  0x8a   :  { %758 = vmatprep.subr.bf16.mxu0 %v954_v0 }
  0x8d   :  { %760 = vmatpush3.bf16.msra.mxu0 %v759_v9 }
  0x8e   :  { %761 = vmatprep.subr.bf16.mxu0 %v954_v0 }
  0x91   :  { %763 = vmatpush3.bf16.msra.mxu0 %v762_v12 }
  0x92   :  { %764 = vmatprep.subr.bf16.mxu0 %v954_v0 }
  0x95   :  { %766 = vmatpush3.bf16.msra.mxu0 %v765_v15 }
  0x96   :  { %767 = vmatprep.subr.bf16.mxu0 %v954_v0 }
  0x99   :  { %769 = vmatpush3.bf16.msra.mxu0 %v768_v18 }
 0x14f   :  { %v186_v52 = vpop.f32.mrb[0].mxu0 }
 0x150   :  { %v187_v53 = vadd.f32 %v487_v51, %v186_v52  ;;  %v592_v54 = vpop.f32.mrb[1].mxu0 }
 0x152   :  { %626 = vmatmul.mubr.f32.vlgmr.msra.gmra.mrb[0].mxu1 %v187_v53 }
 0x153   :  { %695 = vmatprep.mubr.msk.f32.mxu1 %vm955_vm0, %v956_v1  ;;  %772 = vmatpush3.bf16.msra.mxu1 %v771_v22 }
 0x154   :  { %773 = vmatprep.subr.bf16.mxu1 %v954_v0 }
 0x157   :  { %775 = vmatpush3.bf16.msra.mxu1 %v774_v24 }
 0x158   :  { %776 = vmatprep.subr.bf16.mxu1 %v954_v0 }
 0x15b   :  { %778 = vmatpush3.bf16.msra.mxu1 %v777_v27 }
 0x15c   :  { %779 = vmatprep.subr.bf16.mxu1 %v954_v0 }
 0x15f   :  { %781 = vmatpush3.bf16.msra.mxu1 %v780_v30 }
 0x160   :  { %782 = vmatprep.subr.bf16.mxu1 %v954_v0 }
 0x163   :  { %784 = vmatpush3.bf16.msra.mxu1 %v783_v33 }
 0x164   :  { %785 = vmatprep.subr.bf16.mxu1 %v954_v0 }
 0x167   :  { %787 = vmatpush3.bf16.msra.mxu1 %v786_v36 }
 0x168   :  { %788 = vmatprep.subr.bf16.mxu1 %v954_v0 }
 0x16b   :  { %790 = vmatpush3.bf16.msra.mxu1 %v789_v39 }
 0x16c   :  { %791 = vmatprep.subr.bf16.mxu1 %v954_v0  ;;  %v489_v0 = vld [vmem:[%s1143_s7] ss:$0 sm:$0xff] }
 0x16f   :  { %793 = vmatpush3.bf16.msra.mxu1 %v792_v46 }
 0x225   :  { %v272_v1 = vpop.f32.mrb[0].mxu1 }
 0x226   :  { %v627_v5 = vpop.f32.mrb[1].mxu1  ;;  %v276_v6 = vmul.f32 %v272_v1, %v272_v1 }
 0x228   :  { %277 = vadd.xlane.f32.xlu0 %v276_v6 }
 0x2b5   :  { %v278_v40 = vpop.xlane.xlu0 %277 }
 0x2b6   :  { %v279_v41 = vadd.f32 1e-12, %v278_v40 }
 0x2b8   :  { %805 = vrsqrt.f32 %v279_v41 }
 0x2c2   :  { %v806_v42 = vpop.eup %805 }
 0x2c3   :  { %v281_v43 = vmul.f32 %v806_v42, %v272_v1 }
 0x2c5   :  { %661 = vmatmul.mubr.f32.vlgmr.msra.gmra.mrb[2].mxu0 %v281_v43 }
 0x398   :  { %v371_v48 = vpop.f32.mrb[2].mxu0 }
 0x399   :  { %v372_v49 = vadd.f32 %v488_v47, %v371_v48  ;;  %v662_v50 = vpop.f32.mrb[3].mxu0 }
 0x39b   :  { %v375_v51 = vmax.f32 %v372_v49, 0.0 }
 0x39d   :  { %696 = vmatmul.mubr.f32.vlgmr.msra.gmra.mrb[2].mxu1 %v375_v51 }
 0x470   :  { %v465_v52 = vpop.f32.mrb[2].mxu1 }
 0x471   :  { %v466_v53 = vadd.f32 %v489_v0, %v465_v52  ;;  %v697_v54 = vpop.f32.mrb[3].mxu1 }
 0x473   :  { %469 = vst [vmem:[#allocation11] sm:$0xff] %v466_v53 }
 0x474   :  { %928 = shalt.err (!%p925_p2)
}
 0x475   :  { %s929_s29 = scalar_lea.hbm %s1144_s8, 128 }
 0x476   :  { %p930_p3 = scmp.ne.s32.totalorder %s1144_s8, %s929_s29  ;;  %p933_p4 = scmp.lt.u32.totalorder %s929_s29, %s1144_s8 }
 0x478   :  { %p935_p5 = pnand %p933_p4, %p930_p3 }
 0x47a   :  { %938 = shalt.err (!%p935_p5)
}
 0x47b   :  { %479 = dma.vmem_to_hbm [thread:$0]  %s477_s25, 128, %s1144_s8, [#allocation4]  }
 0x47c   :  { %945 = dma.done.wait [#allocation4], 128  }
 0x47d   :  { %946 = vsyncadd [#allocation4], 4294967168 }
 0x47e   :  { %483 = vsyncpa [#allocation3], 1 }
 0x47f   :  { %484 = vsyncpa [#allocation6], 1 }
 0x480   :  { %485 = vsyncpa [#allocation9], 1 }
 0x481   :  { %486 = vsyncpa [#allocation4], 1 }

// kernel: tpu_custom_call.1
= control target key start
LH: loop header
LB: loop body
LE: loop exit
PB: predicated region body
PF: predicated region fallthrough
CT: control target
= control target key end

     0   :  { %13 = vsyncpa [#allocation3], 0  ;;  %s1136_s0 = inlined_call_operand.hbm [shape: f32[8,128], index: 0, kind: input, shape index: {}]   ;;  %s1137_s1 = inlined_call_operand.hbm [shape: f32[128,128], index: 1, kind: input, shape index: {}]   ;;  %s1138_s2 = inlined_call_operand.vmem [shape: f32[1,128], index: 2, kind: input, shape index: {}]   ;;  %s1139_s3 = inlined_call_operand.hbm [shape: f32[128,128], index: 3, kind: input, shape index: {}]   ;;  %s1140_s4 = inlined_call_operand.hbm [shape: f32[128,128], index: 4, kind: input, shape index: {}]   ;;  %s1141_s5 = inlined_call_operand.vmem [shape: f32[1,128], index: 5, kind: input, shape index: {}]   ;;  %s1142_s6 = inlined_call_operand.hbm [shape: f32[128,128], index: 6, kind: input, shape index: {}]   ;;  %s1143_s7 = inlined_call_operand.vmem [shape: f32[1,128], index: 7, kind: input, shape index: {}]   ;;  %s1144_s8 = inlined_call_operand.hbm [shape: f32[8,128], index: 8, kind: output, shape index: {}]  }
   0x1   :  { %14 = vsyncpa [#allocation6], 0 }
   0x2   :  { %15 = vsyncpa [#allocation9], 0 }
   0x3   :  { %16 = vsyncpa [#allocation4], 0  ;;  %s947_s27 = smov [#allocation5]   ;;  %s807_s9 = scalar_lea.hbm %s1137_s1, 2048 }
   0x4   :  { %s32_s28 = sshll.u32 %s947_s27, 4  ;;  %p808_p0 = scmp.ne.s32.totalorder %s1137_s1, %s807_s9  ;;  %s33_s28 = int_to_ptr.vmem [resolvable:$true] %s32_s28 }
   0x5   :  { %p811_p1 = scmp.lt.u32.totalorder %s807_s9, %s1137_s1 }
   0x7   :  { %p813_p2 = pnand %p811_p1, %p808_p0 }
   0x9   :  { %816 = shalt.err (!%p813_p2)
}
   0xa   :  { %s817_s14 = scalar_lea.vmem %s33_s28, 2048  ;;  %p822_p4 = scmp.lt.s32.totalorder %s33_s28, %s33_s28 }
   0xb   :  { %p818_p3 = scmp.ne.s32.totalorder %s33_s28, %s817_s14  ;;  %p823_p5 = scmp.lt.s32.totalorder %s817_s14, %s817_s14 }
   0xd   :  { %p824_p6 = por %p823_p5, %p822_p4 }
   0xf   :  { %p825_p7 = pnand %p824_p6, %p818_p3 }
  0x11   :  { %828 = shalt.err (!%p825_p7)
}
  0x12   :  { %s948_s15 = smov 128   ;;  %s949_s16 = smov 8  }
  0x13   :  { %38 = dma.hbm_to_vmem [thread:$0]  %s1137_s1, 2048, %s33_s28, [#allocation6], %s948_s15, %s948_s15, %s949_s16  }
  0x14   :  { %s950_s19 = smov [#allocation8]   ;;  %s951_s21 = smov [#allocation2]  }
  0x15   :  { %s58_s20 = sshll.u32 %s950_s19, 4  ;;  %s23_s22 = sshll.u32 %s951_s21, 4  ;;  %s59_s20 = int_to_ptr.vmem [resolvable:$true] %s58_s20  ;;  %s24_s22 = int_to_ptr.vmem [resolvable:$true] %s23_s22 }
  0x16   :  { %s829_s25 = scalar_lea.hbm %s1140_s4, 2048 }
  0x17   :  { %p830_p8 = scmp.ne.s32.totalorder %s1140_s4, %s829_s25  ;;  %p833_p9 = scmp.lt.u32.totalorder %s829_s25, %s1140_s4 }
  0x19   :  { %p835_p10 = pnand %p833_p9, %p830_p8 }
  0x1b   :  { %838 = shalt.err (!%p835_p10)
}
  0x1c   :  { %s839_s1 = scalar_lea.vmem %s59_s20, 2048  ;;  %p844_p12 = scmp.lt.s32.totalorder %s59_s20, %s59_s20 }
  0x1d   :  { %p840_p11 = scmp.ne.s32.totalorder %s59_s20, %s839_s1  ;;  %p845_p13 = scmp.lt.s32.totalorder %s839_s1, %s839_s1 }
  0x1f   :  { %p846_p0 = por %p845_p13, %p844_p12 }
  0x21   :  { %p847_p1 = pnand %p846_p0, %p840_p11 }
  0x23   :  { %850 = shalt.err (!%p847_p1)
}
  0x24   :  { %64 = dma.hbm_to_vmem [thread:$0]  %s1140_s4, 2048, %s59_s20, [#allocation9], %s948_s15, %s948_s15, %s949_s16  }
  0x25   :  { %s851_s12 = scalar_lea.hbm %s1136_s0, 128 }
  0x26   :  { %p852_p2 = scmp.ne.s32.totalorder %s1136_s0, %s851_s12  ;;  %p855_p3 = scmp.lt.u32.totalorder %s851_s12, %s1136_s0 }
  0x28   :  { %p857_p4 = pnand %p855_p3, %p852_p2 }
  0x2a   :  { %860 = shalt.err (!%p857_p4)
}
  0x2b   :  { %s861_s19 = scalar_lea.vmem %s24_s22, 128  ;;  %p866_p6 = scmp.lt.s32.totalorder %s24_s22, %s24_s22 }
  0x2c   :  { %p862_p5 = scmp.ne.s32.totalorder %s24_s22, %s861_s19  ;;  %p867_p7 = scmp.lt.s32.totalorder %s861_s19, %s861_s19 }
  0x2e   :  { %p868_p8 = por %p867_p7, %p866_p6 }
  0x30   :  { %p869_p9 = pnand %p868_p8, %p862_p5 }
  0x32   :  { %872 = shalt.err (!%p869_p9)
}
  0x33   :  { %26 = dma.hbm_to_vmem [thread:$0]  %s1136_s0, 128, %s24_s22, [#allocation3]  }
  0x34   :  { %s952_s21 = smov [#allocation7]   ;;  %s953_s24 = smov [#allocation10]  }
  0x35   :  { %s46_s23 = sshll.u32 %s952_s21, 4  ;;  %s72_s25 = sshll.u32 %s953_s24, 4  ;;  %s47_s23 = int_to_ptr.vmem [resolvable:$true] %s46_s23  ;;  %s73_s25 = int_to_ptr.vmem [resolvable:$true] %s72_s25 }
  0x36   :  { %s873_s29 = scalar_lea.hbm %s1139_s3, 2048 }
  0x37   :  { %p874_p10 = scmp.ne.s32.totalorder %s1139_s3, %s873_s29  ;;  %p877_p11 = scmp.lt.u32.totalorder %s873_s29, %s1139_s3 }
  0x39   :  { %p879_p12 = pnand %p877_p11, %p874_p10 }
  0x3b   :  { %882 = shalt.err (!%p879_p12)
}
  0x3c   :  { %s883_s0 = scalar_lea.vmem %s47_s23, 2048  ;;  %p888_p0 = scmp.lt.s32.totalorder %s47_s23, %s47_s23 }
  0x3d   :  { %p884_p13 = scmp.ne.s32.totalorder %s47_s23, %s883_s0  ;;  %p889_p1 = scmp.lt.s32.totalorder %s883_s0, %s883_s0 }
  0x3f   :  { %p890_p2 = por %p889_p1, %p888_p0 }
  0x41   :  { %p891_p3 = pnand %p890_p2, %p884_p13 }
  0x43   :  { %894 = shalt.err (!%p891_p3)
}
  0x44   :  { %52 = dma.hbm_to_vmem [thread:$0]  %s1139_s3, 2048, %s47_s23, [#allocation6], %s948_s15, %s948_s15, %s949_s16  }
  0x45   :  { %s895_s13 = scalar_lea.hbm %s1142_s6, 2048 }
  0x46   :  { %p896_p4 = scmp.ne.s32.totalorder %s1142_s6, %s895_s13  ;;  %p899_p5 = scmp.lt.u32.totalorder %s895_s13, %s1142_s6 }
  0x48   :  { %p901_p6 = pnand %p899_p5, %p896_p4 }
  0x4a   :  { %904 = shalt.err (!%p901_p6)
}
  0x4b   :  { %s905_s4 = scalar_lea.vmem %s73_s25, 2048  ;;  %p910_p8 = scmp.lt.s32.totalorder %s73_s25, %s73_s25 }
  0x4c   :  { %p906_p7 = scmp.ne.s32.totalorder %s73_s25, %s905_s4  ;;  %p911_p9 = scmp.lt.s32.totalorder %s905_s4, %s905_s4 }
  0x4e   :  { %p912_p10 = por %p911_p9, %p910_p8 }
  0x50   :  { %p913_p11 = pnand %p912_p10, %p906_p7 }
  0x52   :  { %916 = shalt.err (!%p913_p11)
}
  0x53   :  { %78 = dma.hbm_to_vmem [thread:$0]  %s1142_s6, 2048, %s73_s25, [#allocation9], %s948_s15, %s948_s15, %s949_s16  }
  0x54   :  { %939 = dma.done.wait [#allocation3], 128  }
  0x55   :  { %940 = vsyncadd [#allocation3], 4294967168 }
  0x56   :  { %941 = dma.done.wait [#allocation6], 4096  }
  0x57   :  { %942 = vsyncadd [#allocation6], 4294963200 }
  0x58   :  { %943 = dma.done.wait [#allocation9], 4096  }
  0x59   :  { %944 = vsyncadd [#allocation9], 4294963200  ;;  %v954_v0 = vmov 0.0|0.0   ;;  %vm955_vm0 = vmmov 0   ;;  %v956_v1 = vmov 0.0   ;;  %v97_v2 = vld [vmem:[#allocation5] sm:$0xff] }
  0x5a   :  { %698 = vmatprep.subr.bf16.mxu0 %v954_v0  ;;  %590 = vmatprep.mubr.msk.f32.mxu0 %vm955_vm0, %v956_v1  ;;  %v98_v3 = vld [vmem:[#allocation5 + $0x8] sm:$0xff]  ;;  %v99_v4 = vld [vmem:[#allocation5 + $0x10] sm:$0xff]  ;;  %v100_v6 = vld [vmem:[#allocation5 + $0x18] sm:$0xff]  ;;  %s957_s24 = smov [#allocation11]  }
  0x5b   :  { %722 = vmatprep.subr.bf16.mxu1 %v954_v0  ;;  %625 = vmatprep.mubr.msk.f32.mxu1 %vm955_vm0, %v956_v1  ;;  %v699_v5 = vpack.c.bf16 %v98_v3, %v97_v2  ;;  %v702_v7 = vpack.c.bf16 %v100_v6, %v99_v4  ;;  %v101_v8 = vld [vmem:[#allocation5 + $0x20] sm:$0xff]  ;;  %v102_v9 = vld [vmem:[#allocation5 + $0x28] sm:$0xff]  ;;  %v192_v12 = vld [vmem:[#allocation7 + $0x10] sm:$0xff]  ;;  %s476_s25 = sshll.u32 %s957_s24, 4  ;;  %s477_s25 = int_to_ptr.vmem [resolvable:$true] %s476_s25 }
  0x5c   :  { %v190_v10 = vld [vmem:[#allocation7] sm:$0xff]  ;;  %v191_v11 = vld [vmem:[#allocation7 + $0x8] sm:$0xff]  ;;  %v193_v13 = vld [vmem:[#allocation7 + $0x18] sm:$0xff]  ;;  %v705_v14 = vpack.c.bf16 %v102_v9, %v101_v8  ;;  %s917_s26 = scalar_lea.vmem %s477_s25, 128  ;;  %p922_p13 = scmp.lt.s32.totalorder %s477_s25, %s477_s25 }
  0x5d   :  { %700 = vmatpush3.bf16.msra.mxu0 %v699_v5  ;;  %v723_v15 = vpack.c.bf16 %v191_v11, %v190_v10  ;;  %v103_v16 = vld [vmem:[#allocation5 + $0x30] sm:$0xff]  ;;  %v104_v17 = vld [vmem:[#allocation5 + $0x38] sm:$0xff]  ;;  %v726_v18 = vpack.c.bf16 %v193_v13, %v192_v12  ;;  %v194_v19 = vld [vmem:[#allocation7 + $0x20] sm:$0xff]  ;;  %p918_p12 = scmp.ne.s32.totalorder %s477_s25, %s917_s26  ;;  %p923_p0 = scmp.lt.s32.totalorder %s917_s26, %s917_s26 }
  0x5e   :  { %701 = vmatprep.subr.bf16.mxu0 %v954_v0  ;;  %v195_v20 = vld [vmem:[#allocation7 + $0x28] sm:$0xff]  ;;  %v708_v21 = vpack.c.bf16 %v104_v17, %v103_v16  ;;  %v105_v22 = vld [vmem:[#allocation5 + $0x40] sm:$0xff]  ;;  %v196_v25 = vld [vmem:[#allocation7 + $0x30] sm:$0xff] }
  0x5f   :  { %724 = vmatpush3.bf16.msra.mxu1 %v723_v15  ;;  %v106_v23 = vld [vmem:[#allocation5 + $0x48] sm:$0xff]  ;;  %v729_v24 = vpack.c.bf16 %v195_v20, %v194_v19  ;;  %v197_v26 = vld [vmem:[#allocation7 + $0x38] sm:$0xff]  ;;  %v107_v28 = vld [vmem:[#allocation5 + $0x50] sm:$0xff]  ;;  %p924_p1 = por %p923_p0, %p922_p13 }
  0x60   :  { %725 = vmatprep.subr.bf16.mxu1 %v954_v0  ;;  %v711_v27 = vpack.c.bf16 %v106_v23, %v105_v22  ;;  %v108_v29 = vld [vmem:[#allocation5 + $0x58] sm:$0xff]  ;;  %v732_v30 = vpack.c.bf16 %v197_v26, %v196_v25  ;;  %v198_v31 = vld [vmem:[#allocation7 + $0x40] sm:$0xff]  ;;  %v199_v32 = vld [vmem:[#allocation7 + $0x48] sm:$0xff] }
  0x61   :  { %703 = vmatpush3.bf16.msra.mxu0 %v702_v7  ;;  %v714_v33 = vpack.c.bf16 %v108_v29, %v107_v28  ;;  %v109_v34 = vld [vmem:[#allocation5 + $0x60] sm:$0xff]  ;;  %v110_v35 = vld [vmem:[#allocation5 + $0x68] sm:$0xff]  ;;  %v735_v36 = vpack.c.bf16 %v199_v32, %v198_v31  ;;  %v200_v37 = vld [vmem:[#allocation7 + $0x50] sm:$0xff]  ;;  %p925_p2 = pnand %p924_p1, %p918_p12 }
  0x62   :  { %704 = vmatprep.subr.bf16.mxu0 %v954_v0  ;;  %v201_v38 = vld [vmem:[#allocation7 + $0x58] sm:$0xff]  ;;  %v717_v39 = vpack.c.bf16 %v110_v35, %v109_v34  ;;  %v111_v40 = vld [vmem:[#allocation5 + $0x70] sm:$0xff]  ;;  %v202_v43 = vld [vmem:[#allocation7 + $0x60] sm:$0xff] }
  0x63   :  { %727 = vmatpush3.bf16.msra.mxu1 %v726_v18  ;;  %v112_v41 = vld [vmem:[#allocation5 + $0x78] sm:$0xff]  ;;  %v738_v42 = vpack.c.bf16 %v201_v38, %v200_v37  ;;  %v203_v44 = vld [vmem:[#allocation7 + $0x68] sm:$0xff]  ;;  %v204_v48 = vld [vmem:[#allocation7 + $0x70] sm:$0xff] }
  0x64   :  { %728 = vmatprep.subr.bf16.mxu1 %v954_v0  ;;  %v720_v45 = vpack.c.bf16 %v112_v41, %v111_v40  ;;  %v741_v46 = vpack.c.bf16 %v203_v44, %v202_v43  ;;  %v96_v47 = vld [vmem:[#allocation2] sm:$0xff]  ;;  %v282_v55 = vld [vmem:[#allocation8] sm:$0xff]  ;;  %v283_v56 = vld [vmem:[#allocation8 + $0x8] sm:$0xff] }
  0x65   :  { %706 = vmatpush3.bf16.msra.mxu0 %v705_v14  ;;  %v205_v49 = vld [vmem:[#allocation7 + $0x78] sm:$0xff]  ;;  %v284_v57 = vld [vmem:[#allocation8 + $0x10] sm:$0xff]  ;;  %v747_v58 = vpack.c.bf16 %v283_v56, %v282_v55  ;;  %v286_v61 = vld [vmem:[#allocation8 + $0x20] sm:$0xff] }
  0x66   :  { %707 = vmatprep.subr.bf16.mxu0 %v954_v0  ;;  %v744_v50 = vpack.c.bf16 %v205_v49, %v204_v48  ;;  %v487_v51 = vld [vmem:[%s1138_s2] ss:$0 sm:$0xff]  ;;  %v287_v62 = vld [vmem:[#allocation8 + $0x28] sm:$0xff]  ;;  %v288_v2 = vld [vmem:[#allocation8 + $0x30] sm:$0xff] }
  0x67   :  { %730 = vmatpush3.bf16.msra.mxu1 %v729_v24  ;;  %v285_v59 = vld [vmem:[#allocation8 + $0x18] sm:$0xff]  ;;  %v753_v63 = vpack.c.bf16 %v287_v62, %v286_v61  ;;  %v290_v7 = vld [vmem:[#allocation8 + $0x40] sm:$0xff]  ;;  %v291_v8 = vld [vmem:[#allocation8 + $0x48] sm:$0xff] }
  0x68   :  { %731 = vmatprep.subr.bf16.mxu1 %v954_v0  ;;  %v750_v60 = vpack.c.bf16 %v285_v59, %v284_v57  ;;  %v289_v3 = vld [vmem:[#allocation8 + $0x38] sm:$0xff]  ;;  %v759_v9 = vpack.c.bf16 %v291_v8, %v290_v7  ;;  %v292_v10 = vld [vmem:[#allocation8 + $0x50] sm:$0xff]  ;;  %v294_v13 = vld [vmem:[#allocation8 + $0x60] sm:$0xff] }
  0x69   :  { %709 = vmatpush3.bf16.msra.mxu0 %v708_v21  ;;  %v756_v4 = vpack.c.bf16 %v289_v3, %v288_v2  ;;  %v293_v11 = vld [vmem:[#allocation8 + $0x58] sm:$0xff]  ;;  %v295_v14 = vld [vmem:[#allocation8 + $0x68] sm:$0xff]  ;;  %v296_v16 = vld [vmem:[#allocation8 + $0x70] sm:$0xff] }
  0x6a   :  { %710 = vmatprep.subr.bf16.mxu0 %v954_v0  ;;  %v762_v12 = vpack.c.bf16 %v293_v11, %v292_v10  ;;  %v765_v15 = vpack.c.bf16 %v295_v14, %v294_v13  ;;  %v297_v17 = vld [vmem:[#allocation8 + $0x78] sm:$0xff]  ;;  %v376_v19 = vld [vmem:[#allocation10] sm:$0xff]  ;;  %v377_v20 = vld [vmem:[#allocation10 + $0x8] sm:$0xff] }
  0x6b   :  { %733 = vmatpush3.bf16.msra.mxu1 %v732_v30  ;;  %v768_v18 = vpack.c.bf16 %v297_v17, %v296_v16  ;;  %v378_v21 = vld [vmem:[#allocation10 + $0x10] sm:$0xff]  ;;  %v771_v22 = vpack.c.bf16 %v377_v20, %v376_v19  ;;  %v379_v23 = vld [vmem:[#allocation10 + $0x18] sm:$0xff]  ;;  %v380_v25 = vld [vmem:[#allocation10 + $0x20] sm:$0xff] }
  0x6c   :  { %734 = vmatprep.subr.bf16.mxu1 %v954_v0  ;;  %v774_v24 = vpack.c.bf16 %v379_v23, %v378_v21  ;;  %v381_v26 = vld [vmem:[#allocation10 + $0x28] sm:$0xff]  ;;  %v382_v28 = vld [vmem:[#allocation10 + $0x30] sm:$0xff]  ;;  %v383_v29 = vld [vmem:[#allocation10 + $0x38] sm:$0xff] }
  0x6d   :  { %712 = vmatpush3.bf16.msra.mxu0 %v711_v27  ;;  %v777_v27 = vpack.c.bf16 %v381_v26, %v380_v25  ;;  %v780_v30 = vpack.c.bf16 %v383_v29, %v382_v28  ;;  %v384_v31 = vld [vmem:[#allocation10 + $0x40] sm:$0xff]  ;;  %v385_v32 = vld [vmem:[#allocation10 + $0x48] sm:$0xff]  ;;  %v386_v34 = vld [vmem:[#allocation10 + $0x50] sm:$0xff] }
  0x6e   :  { %713 = vmatprep.subr.bf16.mxu0 %v954_v0  ;;  %v387_v35 = vld [vmem:[#allocation10 + $0x58] sm:$0xff]  ;;  %v388_v37 = vld [vmem:[#allocation10 + $0x60] sm:$0xff]  ;;  %v389_v38 = vld [vmem:[#allocation10 + $0x68] sm:$0xff] }
  0x6f   :  { %736 = vmatpush3.bf16.msra.mxu1 %v735_v36  ;;  %v786_v36 = vpack.c.bf16 %v387_v35, %v386_v34  ;;  %v390_v44 = vld [vmem:[#allocation10 + $0x70] sm:$0xff] }
  0x70   :  { %737 = vmatprep.subr.bf16.mxu1 %v954_v0 }
  0x71   :  { %715 = vmatpush3.bf16.msra.mxu0 %v714_v33  ;;  %v783_v33 = vpack.c.bf16 %v385_v32, %v384_v31 }
  0x72   :  { %716 = vmatprep.subr.bf16.mxu0 %v954_v0 }
  0x73   :  { %739 = vmatpush3.bf16.msra.mxu1 %v738_v42 }
  0x74   :  { %740 = vmatprep.subr.bf16.mxu1 %v954_v0 }
  0x75   :  { %718 = vmatpush3.bf16.msra.mxu0 %v717_v39  ;;  %v789_v39 = vpack.c.bf16 %v389_v38, %v388_v37 }
  0x76   :  { %719 = vmatprep.subr.bf16.mxu0 %v954_v0 }
  0x77   :  { %742 = vmatpush3.bf16.msra.mxu1 %v741_v46 }
  0x78   :  { %743 = vmatprep.subr.bf16.mxu1 %v954_v0 }
  0x79   :  { %721 = vmatpush3.bf16.msra.mxu0 %v720_v45  ;;  %v391_v45 = vld [vmem:[#allocation10 + $0x78] sm:$0xff] }
  0x7a   :  { %746 = vmatprep.subr.bf16.mxu0 %v954_v0  ;;  %v792_v46 = vpack.c.bf16 %v391_v45, %v390_v44 }
  0x7b   :  { %745 = vmatpush3.bf16.msra.mxu1 %v744_v50 }
  0x7c   :  { %591 = vmatmul.mubr.f32.vlgmr.msra.gmra.mrb[0].mxu0 %v96_v47  ;;  %770 = vmatprep.subr.bf16.mxu1 %v954_v0  ;;  %v488_v47 = vld [vmem:[%s1141_s5] ss:$0 sm:$0xff] }
  0x7d   :  { %660 = vmatprep.mubr.msk.f32.mxu0 %vm955_vm0, %v956_v1  ;;  %748 = vmatpush3.bf16.msra.mxu0 %v747_v58 }
  0x7e   :  { %749 = vmatprep.subr.bf16.mxu0 %v954_v0 }
  0x81   :  { %751 = vmatpush3.bf16.msra.mxu0 %v750_v60 }
  0x82   :  { %752 = vmatprep.subr.bf16.mxu0 %v954_v0 }
  0x85   :  { %754 = vmatpush3.bf16.msra.mxu0 %v753_v63 }
  0x86   :  { %755 = vmatprep.subr.bf16.mxu0 %v954_v0 }
  0x89   :  { %757 = vmatpush3.bf16.msra.mxu0 %v756_v4 }
  0x8a   :  { %758 = vmatprep.subr.bf16.mxu0 %v954_v0 }
  0x8d   :  { %760 = vmatpush3.bf16.msra.mxu0 %v759_v9 }
  0x8e   :  { %761 = vmatprep.subr.bf16.mxu0 %v954_v0 }
  0x91   :  { %763 = vmatpush3.bf16.msra.mxu0 %v762_v12 }
  0x92   :  { %764 = vmatprep.subr.bf16.mxu0 %v954_v0 }
  0x95   :  { %766 = vmatpush3.bf16.msra.mxu0 %v765_v15 }
  0x96   :  { %767 = vmatprep.subr.bf16.mxu0 %v954_v0 }
  0x99   :  { %769 = vmatpush3.bf16.msra.mxu0 %v768_v18 }
 0x14f   :  { %v186_v52 = vpop.f32.mrb[0].mxu0 }
 0x150   :  { %v187_v53 = vadd.f32 %v487_v51, %v186_v52  ;;  %v592_v54 = vpop.f32.mrb[1].mxu0 }
 0x152   :  { %626 = vmatmul.mubr.f32.vlgmr.msra.gmra.mrb[0].mxu1 %v187_v53 }
 0x153   :  { %695 = vmatprep.mubr.msk.f32.mxu1 %vm955_vm0, %v956_v1  ;;  %772 = vmatpush3.bf16.msra.mxu1 %v771_v22 }
 0x154   :  { %773 = vmatprep.subr.bf16.mxu1 %v954_v0 }
 0x157   :  { %775 = vmatpush3.bf16.msra.mxu1 %v774_v24 }
 0x158   :  { %776 = vmatprep.subr.bf16.mxu1 %v954_v0 }
 0x15b   :  { %778 = vmatpush3.bf16.msra.mxu1 %v777_v27 }
 0x15c   :  { %779 = vmatprep.subr.bf16.mxu1 %v954_v0 }
 0x15f   :  { %781 = vmatpush3.bf16.msra.mxu1 %v780_v30 }
 0x160   :  { %782 = vmatprep.subr.bf16.mxu1 %v954_v0 }
 0x163   :  { %784 = vmatpush3.bf16.msra.mxu1 %v783_v33 }
 0x164   :  { %785 = vmatprep.subr.bf16.mxu1 %v954_v0 }
 0x167   :  { %787 = vmatpush3.bf16.msra.mxu1 %v786_v36 }
 0x168   :  { %788 = vmatprep.subr.bf16.mxu1 %v954_v0 }
 0x16b   :  { %790 = vmatpush3.bf16.msra.mxu1 %v789_v39 }
 0x16c   :  { %791 = vmatprep.subr.bf16.mxu1 %v954_v0  ;;  %v489_v0 = vld [vmem:[%s1143_s7] ss:$0 sm:$0xff] }
 0x16f   :  { %793 = vmatpush3.bf16.msra.mxu1 %v792_v46 }
 0x225   :  { %v272_v1 = vpop.f32.mrb[0].mxu1 }
 0x226   :  { %v627_v5 = vpop.f32.mrb[1].mxu1  ;;  %v276_v6 = vmul.f32 %v272_v1, %v272_v1 }
 0x228   :  { %277 = vadd.xlane.f32.xlu0 %v276_v6 }
 0x2b5   :  { %v278_v40 = vpop.xlane.xlu0 %277 }
 0x2b6   :  { %v279_v41 = vadd.f32 1e-12, %v278_v40 }
 0x2b8   :  { %805 = vrsqrt.f32 %v279_v41 }
 0x2c2   :  { %v806_v42 = vpop.eup %805 }
 0x2c3   :  { %v281_v43 = vmul.f32 %v806_v42, %v272_v1 }
 0x2c5   :  { %661 = vmatmul.mubr.f32.vlgmr.msra.gmra.mrb[2].mxu0 %v281_v43 }
 0x398   :  { %v371_v48 = vpop.f32.mrb[2].mxu0 }
 0x399   :  { %v372_v49 = vadd.f32 %v488_v47, %v371_v48  ;;  %v662_v50 = vpop.f32.mrb[3].mxu0 }
 0x39b   :  { %v375_v51 = vmax.f32 %v372_v49, 0.0 }
 0x39d   :  { %696 = vmatmul.mubr.f32.vlgmr.msra.gmra.mrb[2].mxu1 %v375_v51 }
 0x470   :  { %v465_v52 = vpop.f32.mrb[2].mxu1 }
 0x471   :  { %v466_v53 = vadd.f32 %v489_v0, %v465_v52  ;;  %v697_v54 = vpop.f32.mrb[3].mxu1 }
 0x473   :  { %469 = vst [vmem:[#allocation11] sm:$0xff] %v466_v53 }
 0x474   :  { %928 = shalt.err (!%p925_p2)
}
 0x475   :  { %s929_s29 = scalar_lea.hbm %s1144_s8, 128 }
 0x476   :  { %p930_p3 = scmp.ne.s32.totalorder %s1144_s8, %s929_s29  ;;  %p933_p4 = scmp.lt.u32.totalorder %s929_s29, %s1144_s8 }
 0x478   :  { %p935_p5 = pnand %p933_p4, %p930_p3 }
 0x47a   :  { %938 = shalt.err (!%p935_p5)
}
 0x47b   :  { %479 = dma.vmem_to_hbm [thread:$0]  %s477_s25, 128, %s1144_s8, [#allocation4]  }
 0x47c   :  { %945 = dma.done.wait [#allocation4], 128  }
 0x47d   :  { %946 = vsyncadd [#allocation4], 4294967168 }
 0x47e   :  { %483 = vsyncpa [#allocation3], 1 }
 0x47f   :  { %484 = vsyncpa [#allocation6], 1 }
 0x480   :  { %485 = vsyncpa [#allocation9], 1 }
 0x481   :  { %486 = vsyncpa [#allocation4], 1 }

</bundles_post_ra>
